<compile_context>
chip_gen: v7x
topology: tpu7x:2x2x1
jax: 0.10.0
libtpu: 0.0.40
codegen_flags: <defaults>
</compile_context>

<pallas_src>
import functools

import jax
import jax.numpy as jnp
from jax.experimental import pallas as pl
from jax.experimental.pallas import tpu as pltpu

H1, H2 = 100, 50
H1_PAD = 128   # first hidden width 100 -> padded to 128 (MXU contraction dim)
H2_PAD = 64    # second hidden width 50 -> padded to 64 (matmul output rows)
H1_TANH = 104  # round_up(100, 8): rows 100..127 of z1 are exactly 0 -> skip tanh
H2_TANH = 56   # round_up(50, 8):  rows 50..63  of z2 are exactly 0 -> skip tanh


def _round_up(n, m):
    return ((n + m - 1) // m) * m


def mlp_kernel(x_ref, w1_ref, b1_ref, w2_ref, b2_ref, w3_ref, b3_ref, o_ref):
    # x_ref: (1, TB) -- batch along the lane axis (lane-dense loads/stores).
    x = x_ref[...]
    tb = x.shape[1]

    # Layer 1 (in=1): rank-1 outer product on the VPU, no MXU round trip.
    # Padded rows (>= 100) of w1/b1 are zero, so z1 rows 100..127 are exactly 0
    # and tanh(0)=0: only the first 104 rows (multiple of 8) go through the EUP.
    z1 = w1_ref[...] * x + b1_ref[...]                                  # (128, TB)
    h1 = jnp.concatenate(
        [jnp.tanh(z1[:H1_TANH, :]),
         jnp.zeros((H1_PAD - H1_TANH, tb), jnp.float32)],
        axis=0,
    )                                                                   # (128, TB)

    # Layer 2: the only real matmul -> MXU with full-f32 precision.
    z2 = (
        jnp.dot(w2_ref[...], h1,
                preferred_element_type=jnp.float32,
                precision=jax.lax.Precision.HIGHEST)                    # (64, TB)
        + b2_ref[...]
    )
    # Rows >= 50 of z2 are exactly zero; tanh only the first 56 rows (mult. of 8).
    h2 = jnp.tanh(z2[:H2_TANH, :])                                      # (56, TB)

    # Layer 3 (out=1): VPU multiply + sublane (XLU) reduction; lane-dense store.
    o_ref[...] = jnp.sum(w3_ref[...] * h2, axis=0, keepdims=True) + b3_ref[...]


def pad_params(params):
    """Zero-pad PyTorch-layout params once, outside the per-call path.

    Exact: padded rows/cols are zero, tanh(0)=0, so they contribute nothing.
    """
    w1, b1, w2, b2, w3, b3 = params
    w1p = jnp.zeros((H1_PAD, 1), jnp.float32).at[:H1, :].set(w1.astype(jnp.float32))
    b1p = jnp.zeros((H1_PAD, 1), jnp.float32).at[:H1, 0].set(b1.astype(jnp.float32))
    w2p = jnp.zeros((H2_PAD, H1_PAD), jnp.float32).at[:H2, :H1].set(w2.astype(jnp.float32))
    b2p = jnp.zeros((H2_PAD, 1), jnp.float32).at[:H2, 0].set(b2.astype(jnp.float32))
    w3p = jnp.zeros((H2_TANH, 1), jnp.float32).at[:H2, 0].set(w3[0].astype(jnp.float32))  # W3^T
    b3p = b3.reshape(1, 1).astype(jnp.float32)
    return (w1p, b1p, w2p, b2p, w3p, b3p)


@functools.partial(jax.jit, static_argnames=("tb",))
def linear_model_forward(x, padded_params, tb=2048):
    """x: (B, 1) float32 -> (B, 1) float32, same semantics as LinearModel.forward.

    `padded_params` comes from pad_params() (done once, not per call).
    """
    w1p, b1p, w2p, b2p, w3p, b3p = padded_params
    B = x.shape[0]

    # Batch tile: forced multiple of 128; capped so the grid keeps >= 2 steps
    # when B > 128 (lets v7x's two TensorCores split the "parallel" batch axis).
    tb = max(128, (int(tb) // 128) * 128)
    TB = min(tb, max(128, _round_up(pl.cdiv(B, 2), 128)))
    B_pad = _round_up(B, TB)
    grid = (B_pad // TB,)

    # Lane-dense transposed input (1, B_pad), zero-padded along the batch.
    x_t = jnp.zeros((1, B_pad), jnp.float32).at[0, :B].set(x[:, 0].astype(jnp.float32))

    y_t = pl.pallas_call(
        mlp_kernel,
        out_shape=jax.ShapeDtypeStruct((1, B_pad), jnp.float32),
        grid=grid,
        in_specs=[
            pl.BlockSpec((1, TB), lambda i: (0, i)),            # x: tiled over batch
            pl.BlockSpec((H1_PAD, 1), lambda i: (0, 0)),        # weights/biases:
            pl.BlockSpec((H1_PAD, 1), lambda i: (0, 0)),        #   constant block index
            pl.BlockSpec((H2_PAD, H1_PAD), lambda i: (0, 0)),   #   -> VMEM-resident,
            pl.BlockSpec((H2_PAD, 1), lambda i: (0, 0)),        #      no re-DMA per step
            pl.BlockSpec((H2_TANH, 1), lambda i: (0, 0)),
            pl.BlockSpec((1, 1), lambda i: (0, 0)),
        ],
        out_specs=pl.BlockSpec((1, TB), lambda i: (0, i)),
        compiler_params=pltpu.CompilerParams(
            dimension_semantics=("parallel",),  # shards batch across v7x's 2 TCs
        ),
    )(x_t, w1p, b1p, w2p, b2p, w3p, b3p)

    return y_t[0, :B].reshape(B, 1)


def init_params(key):
    """PyTorch nn.Linear layout/default init:
       W (fan_out, fan_in), b (fan_out,), Uniform(-1/sqrt(fan_in), 1/sqrt(fan_in))."""
    ks = jax.random.split(key, 6)

    def lin(kw, kb, fan_in, fan_out):
        bound = 1.0 / jnp.sqrt(jnp.float32(fan_in))
        w = jax.random.uniform(kw, (fan_out, fan_in), jnp.float32, -bound, bound)
        b = jax.random.uniform(kb, (fan_out,), jnp.float32, -bound, bound)
        return w, b

    w1, b1 = lin(ks[0], ks[1], 1, 100)
    w2, b2 = lin(ks[2], ks[3], 100, 50)
    w3, b3 = lin(ks[4], ks[5], 50, 1)
    return (w1, b1, w2, b2, w3, b3)


def reference_forward(x, params):
    w1, b1, w2, b2, w3, b3 = params
    hp = jax.lax.Precision.HIGHEST
    y = jnp.tanh(jnp.dot(x, w1.T, precision=hp) + b1)
    y = jnp.tanh(jnp.dot(y, w2.T, precision=hp) + b2)
    return jnp.dot(y, w3.T, precision=hp) + b3


if __name__ == "__main__":
    key = jax.random.PRNGKey(0)
    kx, kx2, kp = jax.random.split(key, 3)
    params = init_params(kp)
    padded = pad_params(params)

    # Small-batch check (single grid step).
    B = 8
    x = jax.random.normal(kx, (B, 1), jnp.float32)
    out = jax.block_until_ready(linear_model_forward(x, padded))
    ref = reference_forward(x, params)
    assert out.shape == (B, 1)
    assert jnp.allclose(out, ref, atol=2e-5, rtol=1e-5), "mismatch vs reference (B=8)"

    # Multi-tile check (exercises the >=2-step parallel grid and batch padding).
    B2 = 300
    x2 = jax.random.normal(kx2, (B2, 1), jnp.float32)
    out2 = jax.block_until_ready(linear_model_forward(x2, padded))
    ref2 = reference_forward(x2, params)
    assert out2.shape == (B2, 1)
    assert jnp.allclose(out2, ref2, atol=2e-5, rtol=1e-5), "mismatch vs reference (B=300)"

    print("KERNEL_OK")
</pallas_src>

<mosaic_0001>
module attributes {stable_mosaic.version = 11 : i64} {
  func.func @mlp_kernel(%arg0: i32, %arg1: memref<1x128xf32, #tpu.memory_space<vmem>>, %arg2: memref<128x1xf32, #tpu.memory_space<vmem>>, %arg3: memref<128x1xf32, #tpu.memory_space<vmem>>, %arg4: memref<64x128xf32, #tpu.memory_space<vmem>>, %arg5: memref<64x1xf32, #tpu.memory_space<vmem>>, %arg6: memref<56x1xf32, #tpu.memory_space<vmem>>, %arg7: memref<1x1xf32, #tpu.memory_space<vmem>>, %arg8: memref<1x128xf32, #tpu.memory_space<vmem>>) attributes {dimension_semantics = [#tpu.dimension_semantics<parallel>], iteration_bounds = array<i64: 1>, scalar_prefetch = 0 : i64, scratch_operands = 0 : i64, tpu.core_type = #tpu.core_type<tc>, window_params = [{transform_indices = @transform_0, window_bounds = array<i64: 1, 128>}, {pipeline_mode = #tpu.pipeline_mode<synchronous>, transform_indices = @transform_1, window_bounds = array<i64: 128, 1>}, {pipeline_mode = #tpu.pipeline_mode<synchronous>, transform_indices = @transform_2, window_bounds = array<i64: 128, 1>}, {pipeline_mode = #tpu.pipeline_mode<synchronous>, transform_indices = @transform_3, window_bounds = array<i64: 64, 128>}, {pipeline_mode = #tpu.pipeline_mode<synchronous>, transform_indices = @transform_4, window_bounds = array<i64: 64, 1>}, {pipeline_mode = #tpu.pipeline_mode<synchronous>, transform_indices = @transform_5, window_bounds = array<i64: 56, 1>}, {pipeline_mode = #tpu.pipeline_mode<synchronous>, transform_indices = @transform_6, window_bounds = array<i64: 1, 1>}, {transform_indices = @transform_7, window_bounds = array<i64: 1, 128>}]} {
    %c0 = arith.constant 0 : index
    %c0_0 = arith.constant 0 : index
    %0 = vector.load %arg1[%c0, %c0_0] : memref<1x128xf32, #tpu.memory_space<vmem>>, vector<1x128xf32>
    %c0_1 = arith.constant 0 : index
    %c0_2 = arith.constant 0 : index
    %1 = vector.load %arg2[%c0_1, %c0_2] : memref<128x1xf32, #tpu.memory_space<vmem>>, vector<128x1xf32>
    %2 = vector.broadcast %1 : vector<128x1xf32> to vector<128x128xf32>
    %3 = vector.broadcast %0 : vector<1x128xf32> to vector<128x128xf32>
    %4 = arith.mulf %2, %3 : vector<128x128xf32>
    %c0_3 = arith.constant 0 : index
    %c0_4 = arith.constant 0 : index
    %5 = vector.load %arg3[%c0_3, %c0_4] : memref<128x1xf32, #tpu.memory_space<vmem>>, vector<128x1xf32>
    %6 = vector.broadcast %5 : vector<128x1xf32> to vector<128x128xf32>
    %7 = arith.addf %4, %6 : vector<128x128xf32>
    %8 = vector.extract_strided_slice %7 {offsets = [0, 0], sizes = [104, 128], strides = [1, 1]} : vector<128x128xf32> to vector<104x128xf32>
    %9 = math.tanh %8 : vector<104x128xf32>
    %cst = arith.constant 0.000000e+00 : f32
    %10 = vector.broadcast %cst : f32 to vector<24x128xf32>
    %11 = tpu.concatenate %9, %10 in 0 : vector<104x128xf32>, vector<24x128xf32> -> vector<128x128xf32>
    %c0_5 = arith.constant 0 : index
    %c0_6 = arith.constant 0 : index
    %12 = vector.load %arg4[%c0_5, %c0_6] : memref<64x128xf32, #tpu.memory_space<vmem>>, vector<64x128xf32>
    %cst_7 = arith.constant dense<0.000000e+00> : vector<64x128xf32>
    %13 = tpu.matmul %12, %11, %cst_7 {dimension_numbers = #tpu.dot_dimension_numbers<[1], [0], [0], [1], [0, 0, 1, 1], [], []>, precision = #tpu.contract_precision<fp32>} : vector<64x128xf32>, vector<128x128xf32>, vector<64x128xf32> -> vector<64x128xf32>
    %c0_8 = arith.constant 0 : index
    %c0_9 = arith.constant 0 : index
    %14 = vector.load %arg5[%c0_8, %c0_9] : memref<64x1xf32, #tpu.memory_space<vmem>>, vector<64x1xf32>
    %15 = vector.broadcast %14 : vector<64x1xf32> to vector<64x128xf32>
    %16 = arith.addf %13, %15 : vector<64x128xf32>
    %17 = vector.extract_strided_slice %16 {offsets = [0, 0], sizes = [56, 128], strides = [1, 1]} : vector<64x128xf32> to vector<56x128xf32>
    %18 = math.tanh %17 : vector<56x128xf32>
    %c0_10 = arith.constant 0 : index
    %c0_11 = arith.constant 0 : index
    %19 = vector.load %arg6[%c0_10, %c0_11] : memref<56x1xf32, #tpu.memory_space<vmem>>, vector<56x1xf32>
    %20 = vector.broadcast %19 : vector<56x1xf32> to vector<56x128xf32>
    %21 = arith.mulf %20, %18 : vector<56x128xf32>
    %cst_12 = arith.constant dense<0.000000e+00> : vector<128xf32>
    %22 = vector.multi_reduction <add>, %21, %cst_12 [0] : vector<56x128xf32> to vector<128xf32>
    %23 = vector.shape_cast %22 : vector<128xf32> to vector<1x128xf32>
    %c0_13 = arith.constant 0 : index
    %c0_14 = arith.constant 0 : index
    %24 = vector.load %arg7[%c0_13, %c0_14] : memref<1x1xf32, #tpu.memory_space<vmem>>, vector<1x1xf32>
    %25 = vector.broadcast %24 : vector<1x1xf32> to vector<1x128xf32>
    %26 = arith.addf %23, %25 : vector<1x128xf32>
    %c0_15 = arith.constant 0 : index
    %c0_16 = arith.constant 0 : index
    %27 = vector.load %arg8[%c0_15, %c0_16] : memref<1x128xf32, #tpu.memory_space<vmem>>, vector<1x128xf32>
    tpu.vector_store %arg8[%c0_15, %c0_16], %26 {strides = array<i32>} : memref<1x128xf32, #tpu.memory_space<vmem>>, vector<1x128xf32>,
    return
  }
  func.func @transform_0(%arg0: i32) -> (i32, i32) {
    %c0_i32 = arith.constant 0 : i32
    %c0_i32_0 = arith.constant 0 : i32
    return %c0_i32, %arg0 : i32, i32
  }
  func.func @transform_1(%arg0: i32) -> (i32, i32) {
    %c0_i32 = arith.constant 0 : i32
    %c0_i32_0 = arith.constant 0 : i32
    %c0_i32_1 = arith.constant 0 : i32
    return %c0_i32, %c0_i32_0 : i32, i32
  }
  func.func @transform_2(%arg0: i32) -> (i32, i32) {
    %c0_i32 = arith.constant 0 : i32
    %c0_i32_0 = arith.constant 0 : i32
    %c0_i32_1 = arith.constant 0 : i32
    return %c0_i32, %c0_i32_0 : i32, i32
  }
  func.func @transform_3(%arg0: i32) -> (i32, i32) {
    %c0_i32 = arith.constant 0 : i32
    %c0_i32_0 = arith.constant 0 : i32
    %c0_i32_1 = arith.constant 0 : i32
    return %c0_i32, %c0_i32_0 : i32, i32
  }
  func.func @transform_4(%arg0: i32) -> (i32, i32) {
    %c0_i32 = arith.constant 0 : i32
    %c0_i32_0 = arith.constant 0 : i32
    %c0_i32_1 = arith.constant 0 : i32
    return %c0_i32, %c0_i32_0 : i32, i32
  }
  func.func @transform_5(%arg0: i32) -> (i32, i32) {
    %c0_i32 = arith.constant 0 : i32
    %c0_i32_0 = arith.constant 0 : i32
    %c0_i32_1 = arith.constant 0 : i32
    return %c0_i32, %c0_i32_0 : i32, i32
  }
  func.func @transform_6(%arg0: i32) -> (i32, i32) {
    %c0_i32 = arith.constant 0 : i32
    %c0_i32_0 = arith.constant 0 : i32
    %c0_i32_1 = arith.constant 0 : i32
    return %c0_i32, %c0_i32_0 : i32, i32
  }
  func.func @transform_7(%arg0: i32) -> (i32, i32) {
    %c0_i32 = arith.constant 0 : i32
    %c0_i32_0 = arith.constant 0 : i32
    return %c0_i32, %arg0 : i32, i32
  }
}

</mosaic_0001>

<bundles_post_ra>
// kernel: linear_model_forward.1
= control target key start
LH: loop header
LB: loop body
LE: loop exit
PB: predicated region body
PF: predicated region fallthrough
CT: control target
= control target key end

     0   :  { %v1854_v0 = vmov 0   ;;  %s2396_s2 = inlined_call_operand.vmem [shape: f32[128,1], index: 2, kind: input, shape index: {}]   ;;  %s2397_s1 = inlined_call_operand.vmem [shape: f32[128,1], index: 1, kind: input, shape index: {}]   ;;  %s2398_s6 = inlined_call_operand.<no memory space> [shape: f32[1,1], index: 6, kind: input, shape index: {}]   ;;  %s2399_s4 = inlined_call_operand.vmem [shape: f32[64,1], index: 4, kind: input, shape index: {}]   ;;  %s2400_s3 = inlined_call_operand.vmem [shape: f32[64,128], index: 3, kind: input, shape index: {}]   ;;  %s2401_s5 = inlined_call_operand.vmem [shape: f32[56,1], index: 5, kind: input, shape index: {}]   ;;  %s2402_s0 = inlined_call_operand.vmem [shape: f32[1,128], index: 0, kind: input, shape index: {}]   ;;  %s2403_s7 = inlined_call_operand.vmem [shape: f32[1,128], index: 7, kind: output, shape index: {}]  }
   0x1   :  { %1813 = vset.pattern.permute.xlu1 %v1854_v0  ;;  %1812 = vset.pattern.permute.xlu0 %v1854_v0  ;;  %v126_v1 = vld [vmem:[%s2396_s2] sm:$0xff]  ;;  %v12_v3 = vstv %s2398_s6  ;;  %v127_v4 = vld [vmem:[%s2396_s2 + $0x8] sm:$0xff]  ;;  %v32_v6 = vld [vmem:[%s2397_s1 + $0x18] sm:$0xff] }
   0x2   :  { %v29_v2 = vld [vmem:[%s2397_s1] sm:$0xff]  ;;  %141 = vperm.xlu1 %1813, %v126_v1   ;;  %13 = vst [vmem:[#allocation2] sm:$0x1] %v12_v3  ;;  %v30_v5 = vld [vmem:[%s2397_s1 + $0x8] sm:$0xff]  ;;  %v31_v7 = vld [vmem:[%s2397_s1 + $0x10] sm:$0xff] }
   0x3   :  { %44 = vperm.xlu0 %1812, %v29_v2   ;;  %v129_v8 = vld [vmem:[%s2396_s2 + $0x18] sm:$0xff]  ;;  %v128_v9 = vld [vmem:[%s2396_s2 + $0x10] sm:$0xff]  ;;  %v34_v10 = vld [vmem:[%s2397_s1 + $0x28] sm:$0xff] }
   0x4   :  { %v33_v11 = vld [vmem:[%s2397_s1 + $0x20] sm:$0xff]  ;;  %v131_v12 = vld [vmem:[%s2396_s2 + $0x28] sm:$0xff]  ;;  %v36_v14 = vld [vmem:[%s2397_s1 + $0x38] sm:$0xff] }
   0x5   :  { %v130_v13 = vld [vmem:[%s2396_s2 + $0x20] sm:$0xff]  ;;  %v35_v15 = vld [vmem:[%s2397_s1 + $0x30] sm:$0xff]  ;;  %v133_v16 = vld [vmem:[%s2396_s2 + $0x38] sm:$0xff] }
   0x6   :  { %146 = vperm.xlu1 %1813, %v127_v4   ;;  %v132_v17 = vld [vmem:[%s2396_s2 + $0x30] sm:$0xff]  ;;  %v38_v18 = vld [vmem:[%s2397_s1 + $0x48] sm:$0xff]  ;;  %v37_v19 = vld [vmem:[%s2397_s1 + $0x40] sm:$0xff] }
   0x7   :  { %49 = vperm.xlu0 %1812, %v30_v5   ;;  %v135_v20 = vld [vmem:[%s2396_s2 + $0x48] sm:$0xff]  ;;  %v134_v21 = vld [vmem:[%s2396_s2 + $0x40] sm:$0xff]  ;;  %v40_v22 = vld [vmem:[%s2397_s1 + $0x58] sm:$0xff] }
   0x8   :  { %v39_v23 = vld [vmem:[%s2397_s1 + $0x50] sm:$0xff]  ;;  %v137_v24 = vld [vmem:[%s2396_s2 + $0x58] sm:$0xff]  ;;  %v138_v26 = vld [vmem:[%s2396_s2 + $0x60] sm:$0xff] }
   0x9   :  { %v136_v25 = vld [vmem:[%s2396_s2 + $0x50] sm:$0xff]  ;;  %v41_v27 = vld [vmem:[%s2397_s1 + $0x60] sm:$0xff]  ;;  %v239_v28 = vld [vmem:[%s2399_s4 + $0x8] sm:$0xff] }
   0xa   :  { %59 = vperm.xlu1 %1813, %v32_v6   ;;  %v238_v29 = vld [vmem:[%s2399_s4] sm:$0xff]  ;;  %v241_v30 = vld [vmem:[%s2399_s4 + $0x18] sm:$0xff]  ;;  %v240_v31 = vld [vmem:[%s2399_s4 + $0x10] sm:$0xff] }
   0xb   :  { %54 = vperm.xlu0 %1812, %v31_v7   ;;  %v243_v32 = vld [vmem:[%s2399_s4 + $0x28] sm:$0xff]  ;;  %v242_v33 = vld [vmem:[%s2399_s4 + $0x20] sm:$0xff]  ;;  %v244_v38 = vld [vmem:[%s2399_s4 + $0x30] sm:$0xff] }
   0xc   :  { %v230_v34 = vld [vmem:[%s2400_s3] sm:$0xff]  ;;  %v1191_v41 = vld [vmem:[%s2401_s5 + $0x10] sm:$0xff]  ;;  %v1190_v42 = vld [vmem:[%s2401_s5 + $0x8] sm:$0xff] }
   0xd   :  { %v1997_v35 = vand.u32 4294901760, %v230_v34  ;;  %v1189_v37 = vld [vmem:[%s2401_s5] sm:$0xff]  ;;  %v1192_v45 = vld [vmem:[%s2401_s5 + $0x18] sm:$0xff]  ;;  %v1195_v46 = vld [vmem:[%s2401_s5 + $0x30] sm:$0xff] }
   0xe   :  { %156 = vperm.xlu1 %1813, %v129_v8   ;;  %v1193_v44 = vld [vmem:[%s2401_s5 + $0x20] sm:$0xff]  ;;  %v1194_v47 = vld [vmem:[%s2401_s5 + $0x28] sm:$0xff] }
   0xf   :  { %151 = vperm.xlu0 %1812, %v128_v9   ;;  %v2000_v36 = vsub.f32 %v230_v34, %v1997_v35  ;;  %v1250_v48 = vld [vmem:[#allocation2] sm:$0x1] }
  0x10   :  { %v2031_v49 = vld [vmem:[%s2402_s0] ss:$0 sm:$0xff] }
  0x11   :  { %2414 = vst [vmem:[#allocation3_spill] sm:$0xff] %v2000_v36  ;;  %v365_v39 = vand.u32 4294901760, %v2000_v36 }
  0x12   :  { %69 = vperm.xlu1 %1813, %v34_v10  }
  0x13   :  { %64 = vperm.xlu0 %1812, %v33_v11   ;;  %v366_v40 = vsub.f32 %v2000_v36, %v365_v39  ;;  %1533 = vmatprep.mubr.f32.mxu0 %v365_v39 }
  0x15   :  { %v367_v43 = vand.u32 4294901760, %v366_v40 }
  0x16   :  { %166 = vperm.xlu1 %1813, %v131_v12  }
  0x17   :  { %161 = vperm.xlu0 %1812, %v130_v13   ;;  %1419 = vmatprep.mubr.f32.mxu1 %v367_v43 }
  0x1a   :  { %79 = vperm.xlu1 %1813, %v36_v14  }
  0x1b   :  { %74 = vperm.xlu0 %1812, %v35_v15  }
  0x1e   :  { %176 = vperm.xlu1 %1813, %v133_v16  }
  0x1f   :  { %171 = vperm.xlu0 %1812, %v132_v17  }
  0x22   :  { %89 = vperm.xlu1 %1813, %v38_v18  }
  0x23   :  { %84 = vperm.xlu0 %1812, %v37_v19  }
  0x26   :  { %186 = vperm.xlu1 %1813, %v135_v20  }
  0x27   :  { %181 = vperm.xlu0 %1812, %v134_v21  }
  0x2a   :  { %99 = vperm.xlu1 %1813, %v40_v22  }
  0x2b   :  { %94 = vperm.xlu0 %1812, %v39_v23  }
  0x2e   :  { %196 = vperm.xlu1 %1813, %v137_v24  }
  0x2f   :  { %191 = vperm.xlu0 %1812, %v136_v25  }
  0x32   :  { %201 = vperm.xlu1 %1813, %v138_v26  }
  0x33   :  { %104 = vperm.xlu0 %1812, %v41_v27  }
  0x36   :  { %253 = vperm.xlu1 %1813, %v239_v28  }
  0x37   :  { %248 = vperm.xlu0 %1812, %v238_v29  }
  0x3a   :  { %263 = vperm.xlu1 %1813, %v241_v30  }
  0x3b   :  { %258 = vperm.xlu0 %1812, %v240_v31  }
  0x3e   :  { %273 = vperm.xlu1 %1813, %v243_v32  }
  0x3f   :  { %268 = vperm.xlu0 %1812, %v242_v33  }
  0x42   :  { %1198 = vperm.xlu1 %1813, %v1189_v37  }
  0x43   :  { %278 = vperm.xlu0 %1812, %v244_v38  }
  0x46   :  { %1208 = vperm.xlu1 %1813, %v1191_v41  }
  0x47   :  { %1203 = vperm.xlu0 %1812, %v1190_v42  }
  0x4a   :  { %1218 = vperm.xlu1 %1813, %v1193_v44  }
  0x4b   :  { %1213 = vperm.xlu0 %1812, %v1192_v45  }
  0x4e   :  { %1228 = vperm.xlu1 %1813, %v1195_v46   ;;  %v231_v46 = vld [vmem:[%s2400_s3 + $0x8] sm:$0xff] }
  0x4f   :  { %1223 = vperm.xlu0 %1812, %v1194_v47  }
  0x53   :  { %1253 = vperm.xlu0 %1812, %v1250_v48  }
  0x81   :  { %v142_v50 = vpop.permute.xlu1 %141 }
  0x82   :  { %v45_v51 = vpop.permute.xlu0 %44 }
  0x83   :  { %v113_v52 = vmul.f32 %v2031_v49, %v45_v51 }
  0x85   :  { %v204_v53 = vadd.f32 %v142_v50, %v113_v52  ;;  %v147_v54 = vpop.permute.xlu1 %146 }
  0x86   :  { %v50_v55 = vpop.permute.xlu0 %49 }
  0x87   :  { %v114_v56 = vmul.f32 %v2031_v49, %v50_v55  ;;  %1814 = vtanh.f32 %v204_v53  ;;  %v2102_v55 = vand.u32 4294901760, %v231_v46 }
  0x89   :  { %v205_v57 = vadd.f32 %v147_v54, %v114_v56  ;;  %v60_v58 = vpop.permute.xlu1 %59 }
  0x8a   :  { %v55_v59 = vpop.permute.xlu0 %54  ;;  %v116_v60 = vmul.f32 %v2031_v49, %v60_v58 }
  0x8b   :  { %1816 = vtanh.f32 %v205_v57  ;;  %v115_v61 = vmul.f32 %v2031_v49, %v55_v59  ;;  %v232_v59 = vld [vmem:[%s2400_s3 + $0x10] sm:$0xff] }
  0x8d   :  { %v157_v62 = vpop.permute.xlu1 %156 }
  0x8e   :  { %v152_v63 = vpop.permute.xlu0 %151  ;;  %v207_v0 = vadd.f32 %v157_v62, %v116_v60  ;;  %v233_v60 = vld [vmem:[%s2400_s3 + $0x18] sm:$0xff]  ;;  %v2121_v62 = vsub.f32 %v231_v46, %v2102_v55 }
  0x8f   :  { %v206_v1 = vadd.f32 %v152_v63, %v115_v61 }
  0x90   :  { %1818 = vtanh.f32 %v207_v0  ;;  %2415 = vst [vmem:[#allocation4_spill] sm:$0xff] %v2121_v62 }
  0x91   :  { %1820 = vtanh.f32 %v206_v1  ;;  %v70_v2 = vpop.permute.xlu1 %69  ;;  %v2037_v4 = vpop.eup %1814  ;;  %v2126_v1 = vand.u32 4294901760, %v232_v59 }
  0x92   :  { %v65_v3 = vpop.permute.xlu0 %64  ;;  %v118_v6 = vmul.f32 %v2031_v49, %v70_v2  ;;  %v286_v8 = vand.u32 4294901760, %v2037_v4  ;;  %v2128_v2 = vand.u32 4294901760, %v233_v60 }
  0x93   :  { %v117_v7 = vmul.f32 %v2031_v49, %v65_v3 }
  0x95   :  { %v2039_v5 = vpop.eup %1816  ;;  %v167_v10 = vpop.permute.xlu1 %166 }
  0x96   :  { %v289_v9 = vand.u32 4294901760, %v2039_v5  ;;  %v162_v11 = vpop.permute.xlu0 %161  ;;  %v209_v12 = vadd.f32 %v167_v10, %v118_v6 }
  0x97   :  { %v208_v13 = vadd.f32 %v162_v11, %v117_v7 }
  0x98   :  { %v2049_v14 = vpack.c.bf16 %v289_v9, %v286_v8  ;;  %1822 = vtanh.f32 %v209_v12  ;;  %v2137_v12 = vsub.f32 %v2039_v5, %v289_v9 }
  0x99   :  { %1824 = vtanh.f32 %v208_v13  ;;  %v80_v15 = vpop.permute.xlu1 %79  ;;  %v235_v13 = vld [vmem:[%s2400_s3 + $0x28] sm:$0xff] }
  0x9a   :  { %v75_v16 = vpop.permute.xlu0 %74  ;;  %1622 = vmatprep.subr.bf16.mxu1 %v2049_v14  ;;  %1694 = vmatprep.subr.bf16.mxu0 %v2049_v14  ;;  %v2053_v17 = vpop.eup %1818  ;;  %v120_v21 = vmul.f32 %v2031_v49, %v80_v15  ;;  %v2148_v15 = vsub.f32 %v2037_v4, %v286_v8  ;;  %v2168_v4 = vsub.f32 %v232_v59, %v2126_v1 }
  0x9b   :  { %1624 = vmatpush3.bf16.msra.mxu1 %v2049_v14  ;;  %1696 = vmatpush3.bf16.msra.mxu0 %v2049_v14  ;;  %v2057_v18 = vpop.eup %1820  ;;  %v295_v19 = vand.u32 4294901760, %v2053_v17  ;;  %v119_v22 = vmul.f32 %v2031_v49, %v75_v16  ;;  %v2407_v16 = vand.u32 4294901760, %v2121_v62  ;;  %v2171_v8 = vsub.f32 %v233_v60, %v2128_v2 }
  0x9c   :  { %v292_v20 = vand.u32 4294901760, %v2057_v18 }
  0x9d   :  { %v177_v23 = vpop.permute.xlu1 %176  ;;  %v2159_v9 = vsub.f32 %v2053_v17, %v295_v19  ;;  %v452_v17 = vand.u32 4294901760, %v2137_v12 }
  0x9e   :  { %v172_v24 = vpop.permute.xlu0 %171  ;;  %v2067_v25 = vpack.c.bf16 %v295_v19, %v292_v20  ;;  %v211_v26 = vadd.f32 %v177_v23, %v120_v21  ;;  %v2154_v5 = vsub.f32 %v2057_v18, %v292_v20  ;;  %v2175_v20 = vand.u32 4294901760, %v235_v13 }
  0x9f   :  { %v210_v27 = vadd.f32 %v172_v24, %v119_v22  ;;  %v445_v19 = vand.u32 4294901760, %v2148_v15  ;;  %v2186_v22 = vsub.f32 %v2121_v62, %v2407_v16  ;;  %v466_v24 = vand.u32 4294901760, %v2159_v9 }
  0xa0   :  { %1826 = vtanh.f32 %v211_v26  ;;  %1626 = vmatprep.subr.bf16.mxu1 %v2067_v25  ;;  %1698 = vmatprep.subr.bf16.mxu0 %v2067_v25  ;;  %v459_v23 = vand.u32 4294901760, %v2154_v5  ;;  %v236_v26 = vld [vmem:[%s2400_s3 + $0x30] sm:$0xff] }
  0xa1   :  { %1828 = vtanh.f32 %v210_v27  ;;  %1628 = vmatpush3.bf16.msra.mxu1 %v2067_v25  ;;  %1700 = vmatpush3.bf16.msra.mxu0 %v2067_v25  ;;  %v90_v28 = vpop.permute.xlu1 %89  ;;  %v237_v27 = vld [vmem:[%s2400_s3 + $0x38] sm:$0xff]  ;;  %v1717_v16 = vpack.c.bf16 %v452_v17, %v445_v19 }
  0xa2   :  { %v85_v29 = vpop.permute.xlu0 %84  ;;  %v2073_v30 = vpop.eup %1822  ;;  %v122_v34 = vmul.f32 %v2031_v49, %v90_v28  ;;  %v2223_v46 = vand.u32 4294901760, %v237_v27 }
  0xa3   :  { %v2075_v31 = vpop.eup %1824  ;;  %v301_v32 = vand.u32 4294901760, %v2073_v30  ;;  %v121_v37 = vmul.f32 %v2031_v49, %v85_v29 }
  0xa4   :  { %v298_v33 = vand.u32 4294901760, %v2075_v31 }
  0xa5   :  { %v187_v38 = vpop.permute.xlu1 %186  ;;  %v2201_v29 = vsub.f32 %v2073_v30, %v301_v32 }
  0xa6   :  { %v182_v39 = vpop.permute.xlu0 %181  ;;  %v2085_v40 = vpack.c.bf16 %v301_v32, %v298_v33  ;;  %v213_v41 = vadd.f32 %v187_v38, %v122_v34  ;;  %v2405_v34 = vand.u32 4294901760, %v2168_v4  ;;  %v453_v32 = vsub.f32 %v2137_v12, %v452_v17 }
  0xa7   :  { %v212_v42 = vadd.f32 %v182_v39, %v121_v37  ;;  %v2404_v37 = vand.u32 4294901760, %v2171_v8 }
  0xa8   :  { %1830 = vtanh.f32 %v213_v41  ;;  %1630 = vmatprep.subr.bf16.mxu1 %v2085_v40  ;;  %1702 = vmatprep.subr.bf16.mxu0 %v2085_v40  ;;  %v2211_v41 = vsub.f32 %v2075_v31, %v298_v33  ;;  %v460_v31 = vsub.f32 %v2154_v5, %v459_v23  ;;  %v467_v33 = vsub.f32 %v2159_v9, %v466_v24 }
  0xa9   :  { %1832 = vtanh.f32 %v212_v42  ;;  %1632 = vmatpush3.bf16.msra.mxu1 %v2085_v40  ;;  %1704 = vmatpush3.bf16.msra.mxu0 %v2085_v40  ;;  %v100_v43 = vpop.permute.xlu1 %99  ;;  %v386_v60 = vsub.f32 %v2168_v4, %v2405_v34 }
  0xaa   :  { %v95_v44 = vpop.permute.xlu0 %94  ;;  %v2091_v45 = vpop.eup %1826  ;;  %v124_v51 = vmul.f32 %v2031_v49, %v100_v43  ;;  %v2217_v43 = vsub.f32 %v235_v13, %v2175_v20  ;;  %v473_v59 = vand.u32 4294901760, %v2211_v41  ;;  %v461_v13 = vand.u32 4294901760, %v460_v31 }
  0xab   :  { %v2096_v47 = vpop.eup %1828  ;;  %v307_v48 = vand.u32 4294901760, %v2091_v45  ;;  %v123_v52 = vmul.f32 %v2031_v49, %v95_v44  ;;  %v2221_v44 = vand.u32 4294901760, %v236_v26 }
  0xac   :  { %v304_v50 = vand.u32 4294901760, %v2096_v47  ;;  %v474_v34 = vsub.f32 %v2211_v41, %v473_v59 }
  0xad   :  { %v197_v53 = vpop.permute.xlu1 %196 }
  0xae   :  { %v192_v54 = vpop.permute.xlu0 %191  ;;  %v2108_v56 = vpack.c.bf16 %v307_v48, %v304_v50  ;;  %v215_v57 = vadd.f32 %v197_v53, %v124_v51  ;;  %v446_v51 = vsub.f32 %v2148_v15, %v445_v19 }
  0xaf   :  { %v214_v58 = vadd.f32 %v192_v54, %v123_v52  ;;  %v377_v52 = vand.u32 4294901760, %v2186_v22  ;;  %v480_v54 = vand.u32 4294901760, %v2201_v29  ;;  %v468_v22 = vand.u32 4294901760, %v467_v33 }
  0xb0   :  { %1834 = vtanh.f32 %v215_v57  ;;  %1634 = vmatprep.subr.bf16.mxu1 %v2108_v56  ;;  %1706 = vmatprep.subr.bf16.mxu0 %v2108_v56  ;;  %v2237_v57 = vsub.f32 %v2096_v47, %v304_v50  ;;  %v2260_v50 = vsub.f32 %v236_v26, %v2221_v44 }
  0xb1   :  { %1836 = vtanh.f32 %v214_v58  ;;  %1636 = vmatpush3.bf16.msra.mxu1 %v2108_v56  ;;  %1708 = vmatpush3.bf16.msra.mxu0 %v2108_v56  ;;  %v202_v7 = vpop.permute.xlu1 %201  ;;  %v2242_v58 = vsub.f32 %v2091_v45, %v307_v48  ;;  %v454_v45 = vand.u32 4294901760, %v453_v32  ;;  %v2410_v48 = vand.u32 4294901760, %v2217_v43 }
  0xb2   :  { %v105_v61 = vpop.permute.xlu0 %104  ;;  %v2123_v63 = vpop.eup %1830  ;;  %v481_v32 = vsub.f32 %v2201_v29, %v480_v54 }
  0xb3   :  { %v125_v0 = vmul.f32 %v2031_v49, %v105_v61  ;;  %v2130_v3 = vpop.eup %1832  ;;  %v313_v6 = vand.u32 4294901760, %v2123_v63  ;;  %v234_v49 = vld [vmem:[%s2400_s3 + $0x20] sm:$0xff]  ;;  %v2251_v61 = vsub.f32 %v2171_v8, %v2404_v37  ;;  %v487_v37 = vand.u32 4294901760, %v2237_v57 }
  0xb4   :  { %v310_v10 = vand.u32 4294901760, %v2130_v3  ;;  %v2173_v18 = vand.u32 4294901760, %v234_v49  ;;  %v494_v26 = vand.u32 4294901760, %v2242_v58  ;;  %v482_v17 = vand.u32 4294901760, %v481_v32 }
  0xb5   :  { %v216_v11 = vadd.f32 %v202_v7, %v125_v0  ;;  %v2263_v7 = vsub.f32 %v237_v27, %v2223_v46  ;;  %v2276_v27 = vsub.f32 %v2123_v63, %v313_v6  ;;  %v397_v33 = vand.u32 4294901760, %v2251_v61 }
  0xb6   :  { %v2165_v21 = vpack.c.bf16 %v313_v6, %v310_v10  ;;  %v2214_v42 = vsub.f32 %v234_v49, %v2173_v18  ;;  %v447_v49 = vand.u32 4294901760, %v446_v51  ;;  %v387_v51 = vand.u32 4294901760, %v386_v60 }
  0xb7   :  { %1838 = vtanh.f32 %v216_v11  ;;  %v2284_v31 = vsub.f32 %v2130_v3, %v310_v10  ;;  %v416_v6 = vsub.f32 %v2217_v43, %v2410_v48  ;;  %v1649_v60 = vpack.c.bf16 %v468_v22, %v461_v13 }
  0xb8   :  { %1638 = vmatprep.subr.bf16.mxu1 %v2165_v21  ;;  %1710 = vmatprep.subr.bf16.mxu0 %v2165_v21  ;;  %v2411_v0 = vand.u32 4294901760, %v2214_v42  ;;  %v425_v3 = vand.u32 4294901760, %v2260_v50  ;;  %v435_v10 = vand.u32 4294901760, %v2263_v7  ;;  %v488_v19 = vsub.f32 %v2237_v57, %v487_v37 }
  0xb9   :  { %1640 = vmatpush3.bf16.msra.mxu1 %v2165_v21  ;;  %1712 = vmatpush3.bf16.msra.mxu0 %v2165_v21  ;;  %v495_v61 = vsub.f32 %v2242_v58, %v494_v26  ;;  %v475_v48 = vand.u32 4294901760, %v474_v34 }
  0xba   :  { %v2196_v28 = vpop.eup %1834  ;;  %v406_v63 = vsub.f32 %v2214_v42, %v2411_v0  ;;  %v426_v0 = vsub.f32 %v2260_v50, %v425_v3  ;;  %v436_v34 = vsub.f32 %v2263_v7, %v435_v10 }
  0xbb   :  { %v2205_v38 = vpop.eup %1836  ;;  %v2406_v39 = vand.u32 4294901760, %v2196_v28  ;;  %v2418_v13 = vand.u32 4294901760, %v2196_v28  ;;  %v496_v36 = vand.u32 4294901760, %v495_v61 }
  0xbc   :  { %v316_v30 = vand.u32 4294901760, %v2205_v38  ;;  %v407_v32 = vand.u32 4294901760, %v406_v63 }
  0xbd   :  { %v2309_v22 = vsub.f32 %v2196_v28, %v2418_v13  ;;  %v1653_v28 = vpack.c.bf16 %v482_v17, %v475_v48  ;;  %v2421_v48 = vand.u32 4294901760, %v2214_v42 }
  0xbe   :  { %v2231_v53 = vpack.c.bf16 %v2406_v39, %v316_v30  ;;  %v1645_v39 = vpack.c.bf16 %v454_v45, %v447_v49  ;;  %v508_v45 = vand.u32 4294901760, %v2276_v27  ;;  %v2417_v49 = vand.u32 4294901760, %v2121_v62 }
  0xbf   :  { %v489_v62 = vand.u32 4294901760, %v488_v19 }
  0xc0   :  { %2416 = vst [vmem:[#allocation5_spill] sm:$0xff] %v2231_v53  ;;  %1642 = vmatprep.subr.bf16.mxu1 %v2231_v53  ;;  %1714 = vmatprep.subr.bf16.mxu0 %v2231_v53 }
  0xc1   :  { %v2254_v47 = vpop.eup %1838  ;;  %1644 = vmatpush3.bf16.msra.mxu1 %v2231_v53  ;;  %1716 = vmatpush3.bf16.msra.mxu0 %v2231_v53  ;;  %v1721_v53 = vpack.c.bf16 %v466_v24, %v459_v23  ;;  %v501_v23 = vand.u32 4294901760, %v2284_v31  ;;  %v2304_v24 = vsub.f32 %v2205_v38, %v316_v30  ;;  %v509_v38 = vsub.f32 %v2276_v27, %v508_v45 }
  0xc2   :  { %v2266_v11 = vand.u32 4294901760, %v2254_v47  ;;  %v2419_v30 = vand.u32 4294901760, %v2168_v4 }
  0xc3   :  { %v515_v63 = vand.u32 4294901760, %v2304_v24  ;;  %v510_v19 = vand.u32 4294901760, %v509_v38 }
  0xc4   :  { %1417 = vmatprep.subr.mxu1 %v2266_v11  ;;  %1531 = vmatprep.subr.mxu0 %v2266_v11 }
  0xc5   :  { %1418 = vmatpush3.msra.mxu1 %v2266_v11  ;;  %1532 = vmatpush3.msra.mxu0 %v2266_v11  ;;  %v516_v61 = vsub.f32 %v2304_v24, %v515_v63 }
  0xc6   :  { %1646 = vmatprep.subr.bf16.mxu1 %v1645_v39  ;;  %1718 = vmatprep.subr.bf16.mxu0 %v1717_v16 }
  0xc7   :  { %1420 = vmatmul.mubr.f32.vlgmr.msra.gmra.mrb[0].mxu1 %v377_v52  ;;  %1534 = vmatmul.mubr.f32.vlgmr.msra.gmra.mrb[0].mxu0 %v2417_v49  ;;  %v417_v52 = vand.u32 4294901760, %v416_v6  ;;  %v1725_v49 = vpack.c.bf16 %v480_v54, %v473_v59  ;;  %v522_v6 = vand.u32 4294901760, %v2309_v22  ;;  %v427_v54 = vand.u32 4294901760, %v426_v0 }
  0xc8   :  { %1648 = vmatpush3.bf16.msra.mxu1 %v1645_v39  ;;  %1720 = vmatpush3.bf16.msra.mxu0 %v1717_v16  ;;  %v502_v16 = vsub.f32 %v2284_v31, %v501_v23  ;;  %v2420_v39 = vand.u32 4294901760, %v2171_v8  ;;  %v1657_v59 = vpack.c.bf16 %v496_v36, %v489_v62  ;;  %v1733_v36 = vpack.c.bf16 %v508_v45, %v501_v23 }
  0xc9   :  { %1650 = vmatprep.subr.bf16.mxu1 %v1649_v60  ;;  %1722 = vmatprep.subr.bf16.mxu0 %v1721_v53  ;;  %v523_v13 = vsub.f32 %v2309_v22, %v522_v6  ;;  %v1673_v23 = vpack.c.bf16 %v2159_v9, %v2154_v5  ;;  %v2424_v5 = vld [vmem:[#allocation5_spill] sm:$0xff] }
  0xca   :  { %1422 = vmatprep.mubr.f32.mxu1 %v387_v51  ;;  %1536 = vmatprep.mubr.f32.mxu0 %v2419_v30  ;;  %v1729_v51 = vpack.c.bf16 %v494_v26, %v487_v37  ;;  %v503_v17 = vand.u32 4294901760, %v502_v16  ;;  %v517_v37 = vand.u32 4294901760, %v516_v61 }
  0xcb   :  { %1423 = vmatmul.mubr.f32.gmra.mrb[2].mxu1 %v397_v33  ;;  %1537 = vmatmul.mubr.f32.gmra.mrb[2].mxu0 %v2420_v39  ;;  %v437_v33 = vand.u32 4294901760, %v436_v34  ;;  %v524_v0 = vand.u32 4294901760, %v523_v13 }
  0xcc   :  { %1652 = vmatpush3.bf16.msra.mxu1 %v1649_v60  ;;  %1724 = vmatpush3.bf16.msra.mxu0 %v1721_v53  ;;  %v2422_v60 = vand.u32 4294901760, %v2217_v43  ;;  %v2329_v53 = vsub.f32 %v2254_v47, %v2266_v11  ;;  %v1661_v62 = vpack.c.bf16 %v510_v19, %v503_v17 }
  0xcd   :  { %1654 = vmatprep.subr.bf16.mxu1 %v1653_v28  ;;  %1726 = vmatprep.subr.bf16.mxu0 %v1725_v49  ;;  %v1665_v47 = vpack.c.bf16 %v524_v0, %v517_v37 }
  0xce   :  { %1425 = vmatprep.mubr.f32.mxu1 %v407_v32  ;;  %1539 = vmatprep.mubr.f32.mxu0 %v2421_v48  ;;  %v529_v26 = vand.u32 4294901760, %v2329_v53  ;;  %v1737_v32 = vpack.c.bf16 %v522_v6, %v515_v63 }
  0xcf   :  { %1426 = vmatmul.mubr.f32.gmra.mrb[4].mxu1 %v417_v52  ;;  %1540 = vmatmul.mubr.f32.gmra.mrb[4].mxu0 %v2422_v60 }
  0xd0   :  { %1656 = vmatpush3.bf16.msra.mxu1 %v1653_v28  ;;  %1728 = vmatpush3.bf16.msra.mxu0 %v1725_v49  ;;  %v530_v45 = vsub.f32 %v2329_v53, %v529_v26 }
  0xd1   :  { %1658 = vmatprep.subr.bf16.mxu1 %v1657_v59  ;;  %1730 = vmatprep.subr.bf16.mxu0 %v1729_v51 }
  0xd2   :  { %1428 = vmatprep.mubr.f32.mxu1 %v427_v54  ;;  %1542 = vmatprep.mubr.f32.mxu0 %v425_v3  ;;  %v531_v3 = vand.u32 4294901760, %v530_v45 }
  0xd3   :  { %1429 = vmatmul.mubr.f32.gmra.mrb[6].mxu1 %v437_v33  ;;  %1543 = vmatmul.mubr.f32.gmra.mrb[6].mxu0 %v435_v10  ;;  %v1669_v10 = vpack.c.bf16 %v2137_v12, %v2148_v15  ;;  %v1677_v12 = vpack.c.bf16 %v2201_v29, %v2211_v41  ;;  %v1689_v15 = vpack.c.bf16 %v2309_v22, %v2304_v24 }
  0xd4   :  { %1660 = vmatpush3.bf16.msra.mxu1 %v1657_v59  ;;  %1732 = vmatpush3.bf16.msra.mxu0 %v1729_v51 }
  0xd5   :  { %1662 = vmatprep.subr.bf16.mxu1 %v1661_v62  ;;  %1734 = vmatprep.subr.bf16.mxu0 %v1733_v36 }
  0xd6   :  { %1457 = vmatprep.mubr.f32.mxu1 %v1997_v35  ;;  %1571 = vmatprep.mubr.f32.mxu0 %v1997_v35 }
  0xd8   :  { %1664 = vmatpush3.bf16.msra.mxu1 %v1661_v62  ;;  %1736 = vmatpush3.bf16.msra.mxu0 %v1733_v36 }
  0xd9   :  { %1666 = vmatprep.subr.bf16.mxu1 %v1665_v47  ;;  %1738 = vmatprep.subr.bf16.mxu0 %v1737_v32 }
  0xdc   :  { %1668 = vmatpush3.bf16.msra.mxu1 %v1665_v47  ;;  %1740 = vmatpush3.bf16.msra.mxu0 %v1737_v32 }
  0xdd   :  { %1455 = vmatprep.subr.mxu1 %v531_v3  ;;  %1569 = vmatprep.subr.mxu0 %v529_v26 }
  0xe0   :  { %1456 = vmatpush3.msra.mxu1 %v531_v3  ;;  %1570 = vmatpush3.msra.mxu0 %v529_v26 }
  0xe1   :  { %1670 = vmatprep.subr.bf16.mxu1 %v1669_v10  ;;  %1742 = vmatprep.subr.bf16.mxu0 %v2049_v14 }
  0xe2   :  { %1458 = vmatmul.mubr.f32.vlgmr.msra.gmra.mrb[0].mxu1 %v2102_v55  ;;  %1572 = vmatmul.mubr.f32.vlgmr.msra.gmra.mrb[0].mxu0 %v2102_v55 }
  0xe3   :  { %1672 = vmatpush3.bf16.msra.mxu1 %v1669_v10  ;;  %1744 = vmatpush3.bf16.msra.mxu0 %v2049_v14  ;;  %v1681_v14 = vpack.c.bf16 %v2242_v58, %v2237_v57 }
  0xe4   :  { %1674 = vmatprep.subr.bf16.mxu1 %v1673_v23  ;;  %1746 = vmatprep.subr.bf16.mxu0 %v2067_v25 }
  0xe5   :  { %1460 = vmatprep.mubr.f32.mxu1 %v2126_v1  ;;  %1574 = vmatprep.mubr.f32.mxu0 %v2126_v1 }
  0xe6   :  { %1461 = vmatmul.mubr.f32.gmra.mrb[2].mxu1 %v2128_v2  ;;  %1575 = vmatmul.mubr.f32.gmra.mrb[2].mxu0 %v2128_v2 }
  0xe7   :  { %1676 = vmatpush3.bf16.msra.mxu1 %v1673_v23  ;;  %1748 = vmatpush3.bf16.msra.mxu0 %v2067_v25  ;;  %v1685_v25 = vpack.c.bf16 %v2276_v27, %v2284_v31 }
  0xe8   :  { %1678 = vmatprep.subr.bf16.mxu1 %v1677_v12  ;;  %1750 = vmatprep.subr.bf16.mxu0 %v2085_v40 }
  0xe9   :  { %1463 = vmatprep.mubr.f32.mxu1 %v2173_v18  ;;  %1577 = vmatprep.mubr.f32.mxu0 %v2173_v18 }
  0xea   :  { %1464 = vmatmul.mubr.f32.gmra.mrb[4].mxu1 %v2175_v20  ;;  %1578 = vmatmul.mubr.f32.gmra.mrb[4].mxu0 %v2175_v20 }
  0xeb   :  { %1680 = vmatpush3.bf16.msra.mxu1 %v1677_v12  ;;  %1752 = vmatpush3.bf16.msra.mxu0 %v2085_v40  ;;  %v2423_v40 = vld [vmem:[#allocation3_spill] sm:$0xff] }
  0xec   :  { %1682 = vmatprep.subr.bf16.mxu1 %v1681_v14  ;;  %1754 = vmatprep.subr.bf16.mxu0 %v2108_v56 }
  0xed   :  { %1466 = vmatprep.mubr.f32.mxu1 %v2221_v44  ;;  %1580 = vmatprep.mubr.f32.mxu0 %v2221_v44 }
  0xee   :  { %1467 = vmatmul.mubr.f32.gmra.mrb[6].mxu1 %v2223_v46  ;;  %1581 = vmatmul.mubr.f32.gmra.mrb[6].mxu0 %v2223_v46 }
  0xef   :  { %1684 = vmatpush3.bf16.msra.mxu1 %v1681_v14  ;;  %1756 = vmatpush3.bf16.msra.mxu0 %v2108_v56  ;;  %v254_v56 = vpop.permute.xlu1 %253 }
  0xf0   :  { %1686 = vmatprep.subr.bf16.mxu1 %v1685_v25  ;;  %1758 = vmatprep.subr.bf16.mxu0 %v2165_v21 }
  0xf1   :  { %1495 = vmatprep.mubr.f32.mxu1 %v2423_v40  ;;  %1609 = vmatprep.mubr.f32.mxu0 %v1997_v35  ;;  %v2425_v35 = vld [vmem:[#allocation4_spill] sm:$0xff] }
  0xf3   :  { %1688 = vmatpush3.bf16.msra.mxu1 %v1685_v25  ;;  %1760 = vmatpush3.bf16.msra.mxu0 %v2165_v21 }
  0xf4   :  { %1690 = vmatprep.subr.bf16.mxu1 %v1689_v15  ;;  %1762 = vmatprep.subr.bf16.mxu0 %v2424_v5 }
  0xf7   :  { %1692 = vmatpush3.bf16.msra.mxu1 %v1689_v15  ;;  %1764 = vmatpush3.bf16.msra.mxu0 %v2424_v5 }
  0xf8   :  { %1493 = vmatprep.subr.mxu1 %v2329_v53  ;;  %1607 = vmatprep.subr.mxu0 %v2266_v11 }
  0xfb   :  { %1494 = vmatpush3.msra.mxu1 %v2329_v53  ;;  %1608 = vmatpush3.msra.mxu0 %v2266_v11 }
  0xfc   :  { %1496 = vmatmul.mubr.f32.vlgmr.msra.gmra.mrb[0].mxu1 %v2425_v35  ;;  %1610 = vmatmul.mubr.f32.vlgmr.msra.gmra.mrb[0].mxu0 %v2102_v55  ;;  %v249_v55 = vpop.permute.xlu0 %248  ;;  %v1256_v35 = vlaneseq }
  0xfd   :  { %1498 = vmatprep.mubr.f32.mxu1 %v2168_v4  ;;  %1612 = vmatprep.mubr.f32.mxu0 %v2126_v1 }
 0x100   :  { %1499 = vmatmul.mubr.f32.gmra.mrb[2].mxu1 %v2171_v8  ;;  %1613 = vmatmul.mubr.f32.gmra.mrb[2].mxu0 %v2128_v2  ;;  %v259_v1 = vpop.permute.xlu0 %258  ;;  %v264_v2 = vpop.permute.xlu1 %263 }
 0x101   :  { %1501 = vmatprep.mubr.f32.mxu1 %v2214_v42  ;;  %1615 = vmatprep.mubr.f32.mxu0 %v2173_v18 }
 0x104   :  { %1502 = vmatmul.mubr.f32.gmra.mrb[4].mxu1 %v2217_v43  ;;  %1616 = vmatmul.mubr.f32.gmra.mrb[4].mxu0 %v2175_v20  ;;  %v269_v9 = vpop.permute.xlu0 %268  ;;  %v274_v20 = vpop.permute.xlu1 %273 }
 0x105   :  { %1504 = vmatprep.mubr.f32.mxu1 %v2260_v50  ;;  %1618 = vmatprep.mubr.f32.mxu0 %v2221_v44 }
 0x108   :  { %1505 = vmatmul.mubr.f32.gmra.mrb[6].mxu1 %v2263_v7  ;;  %1619 = vmatmul.mubr.f32.gmra.mrb[6].mxu0 %v2223_v46  ;;  %v279_v11 = vpop.permute.xlu0 %278  ;;  %v1199_v38 = vpop.permute.xlu1 %1198 }
 0x10c   :  { %v1204_v59 = vpop.permute.xlu0 %1203  ;;  %v1209_v33 = vpop.permute.xlu1 %1208 }
 0x110   :  { %v1214_v62 = vpop.permute.xlu0 %1213  ;;  %v1219_v0 = vpop.permute.xlu1 %1218 }
 0x114   :  { %v1224_v23 = vpop.permute.xlu0 %1223  ;;  %v1229_v40 = vpop.permute.xlu1 %1228 }
 0x1cf   :  { %v1497_v21 = vpop.f32.mrb[0].mxu1  ;;  %v1611_v4 = vpop.f32.mrb[0].mxu0 }
 0x1d0   :  { %v1765_v8 = vadd.f32 %v1497_v21, %v254_v56  ;;  %v713_v18 = vpop.f32.mrb[1].mxu1  ;;  %v1137_v29 = vpop.f32.mrb[1].mxu0 }
 0x1d1   :  { %v1767_v41 = vadd.f32 %v713_v18, %v249_v55 }
 0x1d2   :  { %v1766_v42 = vadd.f32 %v1765_v8, %v1611_v4  ;;  %v1254_v8 = vpop.permute.xlu0 %1253 }
 0x1d3   :  { %v1768_v43 = vadd.f32 %v1767_v41, %v1137_v29  ;;  %v1500_v57 = vpop.f32.mrb[2].mxu1  ;;  %v1614_v44 = vpop.f32.mrb[2].mxu0 }
 0x1d4   :  { %1840 = vtanh.f32 %v1766_v42  ;;  %v1769_v58 = vadd.f32 %v1500_v57, %v264_v2  ;;  %v727_v50 = vpop.f32.mrb[3].mxu1  ;;  %v1149_v46 = vpop.f32.mrb[3].mxu0 }
 0x1d5   :  { %1842 = vtanh.f32 %v1768_v43  ;;  %v1771_v7 = vadd.f32 %v727_v50, %v259_v1  ;;  %v1257_v1 = vshrl.u32 %v1256_v35, 7 }
 0x1d6   :  { %v1770_v27 = vadd.f32 %v1769_v58, %v1614_v44 }
 0x1d7   :  { %v1772_v31 = vadd.f32 %v1771_v7, %v1149_v46  ;;  %v1503_v24 = vpop.f32.mrb[4].mxu1  ;;  %v1617_v22 = vpop.f32.mrb[4].mxu0  ;;  %v1258_v21 = vsub.s32 0, %v1257_v1 }
 0x1d8   :  { %1844 = vtanh.f32 %v1770_v27  ;;  %v1773_v52 = vadd.f32 %v1503_v24, %v274_v20  ;;  %v741_v34 = vpop.f32.mrb[5].mxu1  ;;  %v1161_v49 = vpop.f32.mrb[5].mxu0 }
 0x1d9   :  { %1846 = vtanh.f32 %v1772_v31  ;;  %v1775_v30 = vadd.f32 %v741_v34, %v269_v9  ;;  %v1259_v29 = vrot.slane %v1254_v8, %v1258_v21 }
 0x1da   :  { %v1774_v28 = vadd.f32 %v1773_v52, %v1617_v22 }
 0x1db   :  { %v1776_v16 = vadd.f32 %v1775_v30, %v1161_v49  ;;  %v1506_v39 = vpop.f32.mrb[6].mxu1  ;;  %v1620_v63 = vpop.f32.mrb[6].mxu0 }
 0x1dc   :  { %1848 = vtanh.f32 %v1774_v28  ;;  %v755_v6 = vpop.f32.mrb[7].mxu1  ;;  %v1173_v54 = vpop.f32.mrb[7].mxu0 }
 0x1dd   :  { %1850 = vtanh.f32 %v1776_v16  ;;  %v1777_v51 = vadd.f32 %v755_v6, %v279_v11 }
 0x1de   :  { %v1841_v19 = vpop.eup %1840 }
 0x1df   :  { %v1843_v48 = vpop.eup %1842  ;;  %v1232_v17 = vmul.f32 %v1841_v19, %v1204_v59  ;;  %v1778_v61 = vadd.f32 %v1777_v51, %v1173_v54 }
 0x1e0   :  { %v1231_v13 = vmul.f32 %v1843_v48, %v1199_v38 }
 0x1e1   :  { %1852 = vtanh.f32 %v1778_v61 }
 0x1e2   :  { %v1845_v60 = vpop.eup %1844  ;;  %v1238_v53 = vadd.f32 %v1232_v17, %v1231_v13 }
 0x1e3   :  { %v1847_v36 = vpop.eup %1846  ;;  %v1234_v47 = vmul.f32 %v1845_v60, %v1214_v62 }
 0x1e4   :  { %v1233_v37 = vmul.f32 %v1847_v36, %v1209_v33 }
 0x1e6   :  { %v1849_v26 = vpop.eup %1848  ;;  %v1239_v32 = vadd.f32 %v1238_v53, %v1233_v37 }
 0x1e7   :  { %v1851_v45 = vpop.eup %1850  ;;  %v1236_v12 = vmul.f32 %v1849_v26, %v1224_v23 }
 0x1e8   :  { %v1235_v3 = vmul.f32 %v1851_v45, %v1219_v0  ;;  %v1240_v10 = vadd.f32 %v1239_v32, %v1234_v47 }
 0x1ea   :  { %v1241_v14 = vadd.f32 %v1240_v10, %v1235_v3 }
 0x1eb   :  { %v1853_v25 = vpop.eup %1852 }
 0x1ec   :  { %v1237_v15 = vmul.f32 %v1853_v25, %v1229_v40  ;;  %v1242_v5 = vadd.f32 %v1241_v14, %v1236_v12 }
 0x1ee   :  { %v1243_v55 = vadd.f32 %v1242_v5, %v1237_v15 }
 0x1f0   :  { %v1244_v56 = vrot.slane %v1243_v55, 4 }
 0x1f2   :  { %v1245_v2 = vadd.f32 %v1244_v56, %v1243_v55 }
 0x1f4   :  { %v1246_v9 = vrot.slane %v1245_v2, 2 }
 0x1f6   :  { %v1247_v4 = vadd.f32 %v1246_v9, %v1245_v2 }
 0x1f8   :  { %v1248_v18 = vrot.slane %v1247_v4, 1 }
 0x1fa   :  { %v1249_v41 = vadd.f32 %v1248_v18, %v1247_v4 }
 0x1fc   :  { %v1260_v20 = vadd.f32 %v1259_v29, %v1249_v41 }
 0x1fe   :  { %1261 = vst [vmem:[%s2403_s7] sm:$0x1] %v1260_v20 }

</bundles_post_ra>
